<compile_context>
chip_gen: v5e
topology: v5e:2x2
jax: 0.10.0
libtpu: 0.0.40
codegen_flags: <defaults>
</compile_context>

<pallas_src>
import functools

import jax
import jax.numpy as jnp
import numpy as np
from jax import lax
from jax.experimental import pallas as pl
from jax.experimental.pallas import tpu as pltpu

_PAD = 8                          # spare zero rows on padded VMEM slabs (>= 2 needed)
_VMEM_LIMIT = 56 * 1024 * 1024    # leaves headroom inside v7x's 64 MiB physical VMEM


# ----------------------------------------------------------------------------
# Kernel 1: transposed conv (k=2, s=2) + bias  and  bilinear row-interp
# ----------------------------------------------------------------------------
def _prep_kernel(x1_ref, x2_ref, wa_ref, ba_ref, ah_ref, y1_ref, xh_ref, *, h1, w1):
    # x1_ref: (1, h1*w1, Cin)        bf16  flattened NHWC of x1
    # x2_ref: (1, h2, w2*Cs)         bf16  NHWC of x2, (w, c) folded into lanes
    # wa_ref: (2, Cin, 2*C)          bf16  tconv weights, wa[kh][ci, kw*C + o]
    # ba_ref: (1, 2*C)               f32   tconv bias tiled over kw
    # ah_ref: (Ho, h2)               bf16  align_corners bilinear matrix (rows)
    # y1_ref: (1, 2*h1 + 1, w1, 2*C) bf16  rows ordered (i, kh); memory == NHWC
    #                                      x1_up slab + one junk padding row
    # xh_ref: (1, Ho, w2*Cs)         bf16  row-interpolated x2
    x1 = x1_ref[0]                                     # (h1*w1, Cin) bf16
    bias = ba_ref[...]                                 # (1, 2*C) f32
    c2 = wa_ref.shape[2]
    for kh in range(2):
        res = jnp.dot(x1, wa_ref[kh],
                      preferred_element_type=jnp.float32) + bias     # (h1*w1, 2*C)
        res = res.astype(y1_ref.dtype)
        # TODO(synk): replace by a strided / row-tiled store at production H.
        for i in range(h1):
            y1_ref[0, 2 * i + kh, :, :] = res[i * w1:(i + 1) * w1, :]
    # junk padding row: only ever feeds discarded conv output columns.
    y1_ref[0, 2 * h1, :, :] = jnp.zeros((w1, c2), y1_ref.dtype)

    xh_ref[0, :, :] = jnp.dot(ah_ref[...], x2_ref[0],
                              preferred_element_type=jnp.float32).astype(xh_ref.dtype)


# ----------------------------------------------------------------------------
# Kernel 2: W-interp + split-K im2col + conv3x3+ReLU + conv3x3+ReLU (fused)
# ----------------------------------------------------------------------------
def _fused_conv_kernel(xa_ref, xh_ref, aw_ref, w1_ref, b1_ref, w2_ref, b2_ref,
                       o_ref, x2_pad, im1, mid_pad, im2):
    # xa_ref : (1, Ho*Wo + Wo, C)    bf16  x1_up flat NHWC slab (+ junk pad rows)
    # xh_ref : (1, Ho, w2, Cs)       bf16  row-interpolated x2
    # aw_ref : (Wo, w2)              bf16  align_corners bilinear matrix (cols)
    # w1_ref : (9*(C+Cs), Co1)       bf16  conv1 weights, K ordered (tap, channel)
    # b1_ref : (1, Co1)              f32
    # w2_ref : (9*Co1, Co2)          bf16
    # b2_ref : (1, Co2)              f32
    # o_ref  : (1, (Ho-4)*Wo, Co2)   f32   full-width rows; last 4 width-cols junk
    # x2_pad : VMEM (Ho*Wo+PAD, Cs)        bf16  W-interpolated x2 slab
    # im1    : VMEM ((Ho-2)*Wo, 9*(C+Cs))  bf16  conv1 im2col
    # mid_pad: VMEM ((Ho-2)*Wo+PAD, Co1)   bf16  conv1 output slab
    # im2    : VMEM ((Ho-4)*Wo, 9*Co1)     bf16  conv2 im2col
    ho, w2, c_side = xh_ref.shape[1], xh_ref.shape[2], xh_ref.shape[3]
    c_up = xa_ref.shape[2]
    wo = aw_ref.shape[0]
    cout1 = b1_ref.shape[1]
    c_tot = c_up + c_side
    hw = ho * wo
    m1 = (ho - 2) * wo
    m2 = (ho - 4) * wo

    # --- bilinear W-interp: ONE batched matmul over ho -----------------------
    aw_b = jnp.broadcast_to(aw_ref[...].reshape(1, wo, w2), (ho, wo, w2))
    x2i = lax.dot_general(aw_b, xh_ref[0],
                          dimension_numbers=(((2,), (1,)), ((0,), (0,))),
                          preferred_element_type=jnp.float32)          # (ho, wo, cs)
    x2_pad[0:hw, :] = x2i.reshape(hw, c_side).astype(x2_pad.dtype)
    x2_pad[hw:hw + _PAD, :] = jnp.zeros((_PAD, c_side), x2_pad.dtype)

    # --- conv1: split-K im2col (no concat slab), K = 9*c_tot, ONE matmul -----
    for t in range(9):
        a, b = divmod(t, 3)
        off = a * wo + b
        im1[:, t * c_tot:t * c_tot + c_up] = xa_ref[0, off:off + m1, :]
        im1[:, t * c_tot + c_up:(t + 1) * c_tot] = x2_pad[off:off + m1, :]
    h1res = jnp.dot(im1[...], w1_ref[...], preferred_element_type=jnp.float32)
    mid_pad[0:m1, :] = jnp.maximum(h1res + b1_ref[...], 0.0).astype(mid_pad.dtype)
    mid_pad[m1:m1 + _PAD, :] = jnp.zeros((_PAD, cout1), mid_pad.dtype)

    # --- conv2: im2col, K = 9*cout1, ONE matmul -------------------------------
    for t in range(9):
        a, b = divmod(t, 3)
        off = a * wo + b
        im2[:, t * cout1:(t + 1) * cout1] = mid_pad[off:off + m2, :]
    h2res = jnp.dot(im2[...], w2_ref[...], preferred_element_type=jnp.float32)
    o_ref[0, :, :] = jnp.maximum(h2res + b2_ref[...], 0.0)


# ----------------------------------------------------------------------------
# Glue (layout plumbing / interpolation-matrix construction)
# ----------------------------------------------------------------------------
def interp_matrix(l_out, l_in, dtype=jnp.float32):
    """Bilinear interpolation matrix, align_corners=True semantics."""
    if l_out == 1:
        src = jnp.zeros((1,), jnp.float32)
    else:
        src = jnp.arange(l_out, dtype=jnp.float32) * (l_in - 1) / (l_out - 1)
    lo = jnp.clip(jnp.floor(src), 0, l_in - 1).astype(jnp.int32)
    hi = jnp.minimum(lo + 1, l_in - 1)
    frac = src - lo.astype(jnp.float32)
    rows = jnp.arange(l_out)
    a = jnp.zeros((l_out, l_in), jnp.float32)
    a = a.at[rows, lo].add(1.0 - frac)
    a = a.at[rows, hi].add(frac)
    return a.astype(dtype)


def upconv_block_forward(x1, x2, params):
    """x1: (N, in_ch, H1, W1) NCHW ; x2: (N, side_ch, H2, W2) NCHW."""
    f32, bf16 = jnp.float32, jnp.bfloat16
    n, cin, h1, w1 = x1.shape
    _, c_side, h2, w2 = x2.shape
    c_up = params["tconv_w"].shape[1]
    cout1 = params["conv1_w"].shape[0]
    cout2 = params["conv2_w"].shape[0]
    c_tot = c_up + c_side
    ho, wo = 2 * h1, 2 * w1
    m1, m2 = (ho - 2) * wo, (ho - 4) * wo
    ho2, wo2 = ho - 4, wo - 4

    # ---- boundary layout plumbing (NCHW -> flattened NHWC views, bf16) ------
    x1f = jnp.transpose(x1, (0, 2, 3, 1)).reshape(n, h1 * w1, cin).astype(bf16)
    x2f = jnp.transpose(x2, (0, 2, 3, 1)).reshape(n, h2, w2 * c_side).astype(bf16)

    # tconv weights (Cin, C, kh, kw) -> wa[kh][ci, kw*C + o]; bias tiled on kw
    wa = jnp.transpose(params["tconv_w"], (2, 0, 3, 1)).reshape(2, cin, 2 * c_up).astype(bf16)
    ba = jnp.tile(params["tconv_b"].astype(f32), 2).reshape(1, 2 * c_up)
    ah = interp_matrix(ho, h2, bf16)                    # (Ho, h2)
    aw = interp_matrix(wo, w2, bf16)                    # (Wo, w2)

    # ---- kernel 1: tconv (+bias, pixel-shuffle via layout) + H-interp -------
    y1, xh = pl.pallas_call(
        functools.partial(_prep_kernel, h1=h1, w1=w1),
        out_shape=(jax.ShapeDtypeStruct((n, ho + 1, w1, 2 * c_up), bf16),
                   jax.ShapeDtypeStruct((n, ho, w2 * c_side), bf16)),
        grid=(n,),
        in_specs=[
            pl.BlockSpec((1, h1 * w1, cin), lambda i: (i, 0, 0)),
            pl.BlockSpec((1, h2, w2 * c_side), lambda i: (i, 0, 0)),
            pl.BlockSpec((2, cin, 2 * c_up), lambda i: (0, 0, 0)),
            pl.BlockSpec((1, 2 * c_up), lambda i: (0, 0)),
            pl.BlockSpec((ho, h2), lambda i: (0, 0)),
        ],
        out_specs=(
            pl.BlockSpec((1, ho + 1, w1, 2 * c_up), lambda i: (i, 0, 0, 0)),
            pl.BlockSpec((1, ho, w2 * c_side), lambda i: (i, 0, 0)),
        ),
        compiler_params=pltpu.CompilerParams(dimension_semantics=("parallel",),
                                             vmem_limit_bytes=_VMEM_LIMIT),
    )(x1f, x2f, wa, ba, ah)

    # free reinterpretations (no data movement)
    xa = y1.reshape(n, (ho + 1) * wo, c_up)             # x1_up flat slab + pad rows
    xh4 = xh.reshape(n, ho, w2, c_side)                 # row-interpolated x2

    # conv weights K-fused as (9*Cin, Cout), K ordered (tap, channel);
    # channel order inside each tap matches cat([x1_up, x2_up]).
    w1f = jnp.transpose(params["conv1_w"], (2, 3, 1, 0)).reshape(9 * c_tot, cout1).astype(bf16)
    b1 = params["conv1_b"].astype(f32).reshape(1, cout1)
    w2f = jnp.transpose(params["conv2_w"], (2, 3, 1, 0)).reshape(9 * cout1, cout2).astype(bf16)
    b2 = params["conv2_b"].astype(f32).reshape(1, cout2)

    # ---- kernel 2: W-interp + split-K im2col convs (fused, ReLU'd) ----------
    out_flat = pl.pallas_call(
        _fused_conv_kernel,
        out_shape=jax.ShapeDtypeStruct((n, m2, cout2), f32),
        grid=(n,),
        in_specs=[
            pl.BlockSpec((1, (ho + 1) * wo, c_up), lambda i: (i, 0, 0)),
            pl.BlockSpec((1, ho, w2, c_side), lambda i: (i, 0, 0, 0)),
            pl.BlockSpec((wo, w2), lambda i: (0, 0)),
            pl.BlockSpec((9 * c_tot, cout1), lambda i: (0, 0)),
            pl.BlockSpec((1, cout1), lambda i: (0, 0)),
            pl.BlockSpec((9 * cout1, cout2), lambda i: (0, 0)),
            pl.BlockSpec((1, cout2), lambda i: (0, 0)),
        ],
        out_specs=pl.BlockSpec((1, m2, cout2), lambda i: (i, 0, 0)),
        scratch_shapes=[
            pltpu.VMEM((ho * wo + _PAD, c_side), bf16),   # x2 W-interp slab
            pltpu.VMEM((m1, 9 * c_tot), bf16),            # conv1 im2col (K=72)
            pltpu.VMEM((m1 + _PAD, cout1), bf16),         # conv1 output slab
            pltpu.VMEM((m2, 9 * cout1), bf16),            # conv2 im2col (K=36)
        ],
        compiler_params=pltpu.CompilerParams(dimension_semantics=("parallel",),
                                             vmem_limit_bytes=_VMEM_LIMIT),
    )(xa, xh4, aw, w1f, b1, w2f, b2)

    # drop the 4 junk right-edge columns of the two valid convs, back to NCHW
    out = out_flat.reshape(n, ho2, wo, cout2)[:, :, :wo2, :]
    return jnp.transpose(out, (0, 3, 1, 2))


# ----------------------------------------------------------------------------
# Pure-numpy reference (same math, NCHW, f64) for verification
# ----------------------------------------------------------------------------
def _np_interp_matrix(l_out, l_in):
    src = (np.zeros((1,)) if l_out == 1
           else np.arange(l_out) * (l_in - 1) / (l_out - 1))
    lo = np.clip(np.floor(src), 0, l_in - 1).astype(np.int64)
    hi = np.minimum(lo + 1, l_in - 1)
    frac = src - lo
    a = np.zeros((l_out, l_in))
    a[np.arange(l_out), lo] += 1.0 - frac
    a[np.arange(l_out), hi] += frac
    return a


def ref_forward(x1, x2, p):
    x1 = np.asarray(x1, np.float64)
    x2 = np.asarray(x2, np.float64)
    tw = np.asarray(p["tconv_w"], np.float64)
    tb = np.asarray(p["tconv_b"], np.float64)
    n, ci, h, w = x1.shape
    co = tw.shape[1]
    up = np.zeros((n, co, 2 * h, 2 * w))
    for kh in range(2):
        for kw in range(2):
            up[:, :, kh::2, kw::2] = np.einsum("nchw,co->nohw", x1, tw[:, :, kh, kw])
    up += tb[None, :, None, None]

    ah = _np_interp_matrix(2 * h, x2.shape[2])
    aw = _np_interp_matrix(2 * w, x2.shape[3])
    x2i = np.einsum("oh,nchw,pw->ncop", ah, x2, aw)

    x = np.concatenate([up, x2i], axis=1)

    def conv_relu(x, wgt, b):
        wgt = np.asarray(wgt, np.float64)
        b = np.asarray(b, np.float64)
        ho, wo = x.shape[2] - 2, x.shape[3] - 2
        out = np.zeros((x.shape[0], wgt.shape[0], ho, wo))
        for kh in range(3):
            for kw in range(3):
                out += np.einsum("nchw,oc->nohw",
                                 x[:, :, kh:kh + ho, kw:kw + wo], wgt[:, :, kh, kw])
        out += b[None, :, None, None]
        return np.maximum(out, 0.0)

    x = conv_relu(x, p["conv1_w"], p["conv1_b"])
    x = conv_relu(x, p["conv2_w"], p["conv2_b"])
    return x


# ----------------------------------------------------------------------------
if __name__ == "__main__":
    in_channels = 8
    out_channels = 4
    channels = in_channels // 2           # ConvTranspose output channels
    side_channels = channels              # default side_channels

    key = jax.random.PRNGKey(0)
    ks = jax.random.split(key, 8)
    params = {
        # ConvTranspose2d(in_channels, channels, kernel_size=2, stride=2)
        "tconv_w": 0.1 * jax.random.normal(ks[0], (in_channels, channels, 2, 2), jnp.float32),
        "tconv_b": 0.1 * jax.random.normal(ks[1], (channels,), jnp.float32),
        # Conv2d(channels + side_channels, out_channels, 3)  (padding=0)
        "conv1_w": 0.1 * jax.random.normal(ks[2], (out_channels, channels + side_channels, 3, 3), jnp.float32),
        "conv1_b": 0.1 * jax.random.normal(ks[3], (out_channels,), jnp.float32),
        # Conv2d(out_channels, out_channels, 3)  (padding=0)
        "conv2_w": 0.1 * jax.random.normal(ks[4], (out_channels, out_channels, 3, 3), jnp.float32),
        "conv2_b": 0.1 * jax.random.normal(ks[5], (out_channels,), jnp.float32),
    }

    x1 = jax.random.normal(ks[6], (2, in_channels, 4, 4), jnp.float32)     # NCHW
    x2 = jax.random.normal(ks[7], (2, side_channels, 7, 7), jnp.float32)   # NCHW

    out = upconv_block_forward(x1, x2, params)
    out = jax.block_until_ready(out)

    ref = ref_forward(x1, x2, params)
    assert out.shape == ref.shape, (out.shape, ref.shape)
    # bf16 matmul operands (f32 accumulation) -> looser tolerance than pure f32.
    np.testing.assert_allclose(np.asarray(out, np.float64), ref, rtol=5e-2, atol=3e-2)

    print("KERNEL_OK")
</pallas_src>

<mosaic_0001>
module attributes {stable_mosaic.version = 11 : i64} {
  func.func @_prep_kernel(%arg0: i32, %arg1: memref<1x16x8xbf16, #tpu.memory_space<vmem>>, %arg2: memref<1x7x28xbf16, #tpu.memory_space<vmem>>, %arg3: memref<2x8x8xbf16, #tpu.memory_space<vmem>>, %arg4: memref<1x8xf32, #tpu.memory_space<vmem>>, %arg5: memref<8x7xbf16, #tpu.memory_space<vmem>>, %arg6: memref<1x9x4x8xbf16, #tpu.memory_space<vmem>>, %arg7: memref<1x8x28xbf16, #tpu.memory_space<vmem>>) attributes {dimension_semantics = [#tpu.dimension_semantics<parallel>], iteration_bounds = array<i64: 2>, scalar_prefetch = 0 : i64, scratch_operands = 0 : i64, tpu.core_type = #tpu.core_type<tc>, window_params = [{transform_indices = @transform_0, window_bounds = array<i64: 1, 16, 8>}, {transform_indices = @transform_1, window_bounds = array<i64: 1, 7, 28>}, {pipeline_mode = #tpu.pipeline_mode<synchronous>, transform_indices = @transform_2, window_bounds = array<i64: 2, 8, 8>}, {pipeline_mode = #tpu.pipeline_mode<synchronous>, transform_indices = @transform_3, window_bounds = array<i64: 1, 8>}, {pipeline_mode = #tpu.pipeline_mode<synchronous>, transform_indices = @transform_4, window_bounds = array<i64: 8, 7>}, {transform_indices = @transform_5, window_bounds = array<i64: 1, 9, 4, 8>}, {transform_indices = @transform_6, window_bounds = array<i64: 1, 8, 28>}]} {
    %c0 = arith.constant 0 : index
    %c0_0 = arith.constant 0 : index
    %c0_1 = arith.constant 0 : index
    %0 = vector.load %arg1[%c0, %c0_0, %c0_1] : memref<1x16x8xbf16, #tpu.memory_space<vmem>>, vector<1x16x8xbf16>
    %1 = vector.shape_cast %0 : vector<1x16x8xbf16> to vector<16x8xbf16>
    %c0_2 = arith.constant 0 : index
    %c0_3 = arith.constant 0 : index
    %2 = vector.load %arg4[%c0_2, %c0_3] : memref<1x8xf32, #tpu.memory_space<vmem>>, vector<1x8xf32>
    %c0_4 = arith.constant 0 : index
    %c0_5 = arith.constant 0 : index
    %c0_6 = arith.constant 0 : index
    %3 = vector.load %arg3[%c0_4, %c0_5, %c0_6] : memref<2x8x8xbf16, #tpu.memory_space<vmem>>, vector<1x8x8xbf16>
    %4 = vector.shape_cast %3 : vector<1x8x8xbf16> to vector<8x8xbf16>
    %cst = arith.constant dense<0.000000e+00> : vector<16x8xf32>
    %5 = tpu.matmul %1, %4, %cst {dimension_numbers = #tpu.dot_dimension_numbers<[1], [0], [0], [1], [0, 0, 1, 1], [], []>} : vector<16x8xbf16>, vector<8x8xbf16>, vector<16x8xf32> -> vector<16x8xf32>
    %6 = vector.broadcast %2 : vector<1x8xf32> to vector<16x8xf32>
    %7 = arith.addf %5, %6 : vector<16x8xf32>
    %8 = arith.truncf %7 : vector<16x8xf32> to vector<16x8xbf16>
    %9 = vector.extract_strided_slice %8 {offsets = [0, 0], sizes = [4, 8], strides = [1, 1]} : vector<16x8xbf16> to vector<4x8xbf16>
    %c0_7 = arith.constant 0 : index
    %c0_8 = arith.constant 0 : index
    %c0_9 = arith.constant 0 : index
    %c0_10 = arith.constant 0 : index
    %10 = vector.load %arg6[%c0_7, %c0_8, %c0_9, %c0_10] : memref<1x9x4x8xbf16, #tpu.memory_space<vmem>>, vector<1x1x4x8xbf16>
    %11 = vector.shape_cast %10 : vector<1x1x4x8xbf16> to vector<4x8xbf16>
    %12 = vector.shape_cast %9 : vector<4x8xbf16> to vector<1x1x4x8xbf16>
    tpu.vector_store %arg6[%c0_7, %c0_8, %c0_9, %c0_10], %12 {strides = array<i32>} : memref<1x9x4x8xbf16, #tpu.memory_space<vmem>>, vector<1x1x4x8xbf16>,
    %13 = vector.extract_strided_slice %8 {offsets = [4, 0], sizes = [4, 8], strides = [1, 1]} : vector<16x8xbf16> to vector<4x8xbf16>
    %c0_11 = arith.constant 0 : index
    %c2 = arith.constant 2 : index
    %c0_12 = arith.constant 0 : index
    %c0_13 = arith.constant 0 : index
    %14 = vector.load %arg6[%c0_11, %c2, %c0_12, %c0_13] : memref<1x9x4x8xbf16, #tpu.memory_space<vmem>>, vector<1x1x4x8xbf16>
    %15 = vector.shape_cast %14 : vector<1x1x4x8xbf16> to vector<4x8xbf16>
    %16 = vector.shape_cast %13 : vector<4x8xbf16> to vector<1x1x4x8xbf16>
    tpu.vector_store %arg6[%c0_11, %c2, %c0_12, %c0_13], %16 {strides = array<i32>} : memref<1x9x4x8xbf16, #tpu.memory_space<vmem>>, vector<1x1x4x8xbf16>,
    %17 = vector.extract_strided_slice %8 {offsets = [8, 0], sizes = [4, 8], strides = [1, 1]} : vector<16x8xbf16> to vector<4x8xbf16>
    %c0_14 = arith.constant 0 : index
    %c4 = arith.constant 4 : index
    %c0_15 = arith.constant 0 : index
    %c0_16 = arith.constant 0 : index
    %18 = vector.load %arg6[%c0_14, %c4, %c0_15, %c0_16] : memref<1x9x4x8xbf16, #tpu.memory_space<vmem>>, vector<1x1x4x8xbf16>
    %19 = vector.shape_cast %18 : vector<1x1x4x8xbf16> to vector<4x8xbf16>
    %20 = vector.shape_cast %17 : vector<4x8xbf16> to vector<1x1x4x8xbf16>
    tpu.vector_store %arg6[%c0_14, %c4, %c0_15, %c0_16], %20 {strides = array<i32>} : memref<1x9x4x8xbf16, #tpu.memory_space<vmem>>, vector<1x1x4x8xbf16>,
    %21 = vector.extract_strided_slice %8 {offsets = [12, 0], sizes = [4, 8], strides = [1, 1]} : vector<16x8xbf16> to vector<4x8xbf16>
    %c0_17 = arith.constant 0 : index
    %c6 = arith.constant 6 : index
    %c0_18 = arith.constant 0 : index
    %c0_19 = arith.constant 0 : index
    %22 = vector.load %arg6[%c0_17, %c6, %c0_18, %c0_19] : memref<1x9x4x8xbf16, #tpu.memory_space<vmem>>, vector<1x1x4x8xbf16>
    %23 = vector.shape_cast %22 : vector<1x1x4x8xbf16> to vector<4x8xbf16>
    %24 = vector.shape_cast %21 : vector<4x8xbf16> to vector<1x1x4x8xbf16>
    tpu.vector_store %arg6[%c0_17, %c6, %c0_18, %c0_19], %24 {strides = array<i32>} : memref<1x9x4x8xbf16, #tpu.memory_space<vmem>>, vector<1x1x4x8xbf16>,
    %c1 = arith.constant 1 : index
    %c0_20 = arith.constant 0 : index
    %c0_21 = arith.constant 0 : index
    %25 = vector.load %arg3[%c1, %c0_20, %c0_21] : memref<2x8x8xbf16, #tpu.memory_space<vmem>>, vector<1x8x8xbf16>
    %26 = vector.shape_cast %25 : vector<1x8x8xbf16> to vector<8x8xbf16>
    %cst_22 = arith.constant dense<0.000000e+00> : vector<16x8xf32>
    %27 = tpu.matmul %1, %26, %cst_22 {dimension_numbers = #tpu.dot_dimension_numbers<[1], [0], [0], [1], [0, 0, 1, 1], [], []>} : vector<16x8xbf16>, vector<8x8xbf16>, vector<16x8xf32> -> vector<16x8xf32>
    %28 = vector.broadcast %2 : vector<1x8xf32> to vector<16x8xf32>
    %29 = arith.addf %27, %28 : vector<16x8xf32>
    %30 = arith.truncf %29 : vector<16x8xf32> to vector<16x8xbf16>
    %31 = vector.extract_strided_slice %30 {offsets = [0, 0], sizes = [4, 8], strides = [1, 1]} : vector<16x8xbf16> to vector<4x8xbf16>
    %c0_23 = arith.constant 0 : index
    %c1_24 = arith.constant 1 : index
    %c0_25 = arith.constant 0 : index
    %c0_26 = arith.constant 0 : index
    %32 = vector.load %arg6[%c0_23, %c1_24, %c0_25, %c0_26] : memref<1x9x4x8xbf16, #tpu.memory_space<vmem>>, vector<1x1x4x8xbf16>
    %33 = vector.shape_cast %32 : vector<1x1x4x8xbf16> to vector<4x8xbf16>
    %34 = vector.shape_cast %31 : vector<4x8xbf16> to vector<1x1x4x8xbf16>
    tpu.vector_store %arg6[%c0_23, %c1_24, %c0_25, %c0_26], %34 {strides = array<i32>} : memref<1x9x4x8xbf16, #tpu.memory_space<vmem>>, vector<1x1x4x8xbf16>,
    %35 = vector.extract_strided_slice %30 {offsets = [4, 0], sizes = [4, 8], strides = [1, 1]} : vector<16x8xbf16> to vector<4x8xbf16>
    %c0_27 = arith.constant 0 : index
    %c3 = arith.constant 3 : index
    %c0_28 = arith.constant 0 : index
    %c0_29 = arith.constant 0 : index
    %36 = vector.load %arg6[%c0_27, %c3, %c0_28, %c0_29] : memref<1x9x4x8xbf16, #tpu.memory_space<vmem>>, vector<1x1x4x8xbf16>
    %37 = vector.shape_cast %36 : vector<1x1x4x8xbf16> to vector<4x8xbf16>
    %38 = vector.shape_cast %35 : vector<4x8xbf16> to vector<1x1x4x8xbf16>
    tpu.vector_store %arg6[%c0_27, %c3, %c0_28, %c0_29], %38 {strides = array<i32>} : memref<1x9x4x8xbf16, #tpu.memory_space<vmem>>, vector<1x1x4x8xbf16>,
    %39 = vector.extract_strided_slice %30 {offsets = [8, 0], sizes = [4, 8], strides = [1, 1]} : vector<16x8xbf16> to vector<4x8xbf16>
    %c0_30 = arith.constant 0 : index
    %c5 = arith.constant 5 : index
    %c0_31 = arith.constant 0 : index
    %c0_32 = arith.constant 0 : index
    %40 = vector.load %arg6[%c0_30, %c5, %c0_31, %c0_32] : memref<1x9x4x8xbf16, #tpu.memory_space<vmem>>, vector<1x1x4x8xbf16>
    %41 = vector.shape_cast %40 : vector<1x1x4x8xbf16> to vector<4x8xbf16>
    %42 = vector.shape_cast %39 : vector<4x8xbf16> to vector<1x1x4x8xbf16>
    tpu.vector_store %arg6[%c0_30, %c5, %c0_31, %c0_32], %42 {strides = array<i32>} : memref<1x9x4x8xbf16, #tpu.memory_space<vmem>>, vector<1x1x4x8xbf16>,
    %43 = vector.extract_strided_slice %30 {offsets = [12, 0], sizes = [4, 8], strides = [1, 1]} : vector<16x8xbf16> to vector<4x8xbf16>
    %c0_33 = arith.constant 0 : index
    %c7 = arith.constant 7 : index
    %c0_34 = arith.constant 0 : index
    %c0_35 = arith.constant 0 : index
    %44 = vector.load %arg6[%c0_33, %c7, %c0_34, %c0_35] : memref<1x9x4x8xbf16, #tpu.memory_space<vmem>>, vector<1x1x4x8xbf16>
    %45 = vector.shape_cast %44 : vector<1x1x4x8xbf16> to vector<4x8xbf16>
    %46 = vector.shape_cast %43 : vector<4x8xbf16> to vector<1x1x4x8xbf16>
    tpu.vector_store %arg6[%c0_33, %c7, %c0_34, %c0_35], %46 {strides = array<i32>} : memref<1x9x4x8xbf16, #tpu.memory_space<vmem>>, vector<1x1x4x8xbf16>,
    %cst_36 = arith.constant 0.000000e+00 : bf16
    %47 = vector.broadcast %cst_36 : bf16 to vector<4x8xbf16>
    %c0_37 = arith.constant 0 : index
    %c8 = arith.constant 8 : index
    %c0_38 = arith.constant 0 : index
    %c0_39 = arith.constant 0 : index
    %48 = vector.load %arg6[%c0_37, %c8, %c0_38, %c0_39] : memref<1x9x4x8xbf16, #tpu.memory_space<vmem>>, vector<1x1x4x8xbf16>
    %49 = vector.shape_cast %48 : vector<1x1x4x8xbf16> to vector<4x8xbf16>
    %50 = vector.shape_cast %47 : vector<4x8xbf16> to vector<1x1x4x8xbf16>
    tpu.vector_store %arg6[%c0_37, %c8, %c0_38, %c0_39], %50 {strides = array<i32>} : memref<1x9x4x8xbf16, #tpu.memory_space<vmem>>, vector<1x1x4x8xbf16>,
    %c0_40 = arith.constant 0 : index
    %c0_41 = arith.constant 0 : index
    %51 = vector.load %arg5[%c0_40, %c0_41] : memref<8x7xbf16, #tpu.memory_space<vmem>>, vector<8x7xbf16>
    %c0_42 = arith.constant 0 : index
    %c0_43 = arith.constant 0 : index
    %c0_44 = arith.constant 0 : index
    %52 = vector.load %arg2[%c0_42, %c0_43, %c0_44] : memref<1x7x28xbf16, #tpu.memory_space<vmem>>, vector<1x7x28xbf16>
    %53 = vector.shape_cast %52 : vector<1x7x28xbf16> to vector<7x28xbf16>
    %cst_45 = arith.constant dense<0.000000e+00> : vector<8x28xf32>
    %54 = tpu.matmul %51, %53, %cst_45 {dimension_numbers = #tpu.dot_dimension_numbers<[1], [0], [0], [1], [0, 0, 1, 1], [], []>} : vector<8x7xbf16>, vector<7x28xbf16>, vector<8x28xf32> -> vector<8x28xf32>
    %55 = arith.truncf %54 : vector<8x28xf32> to vector<8x28xbf16>
    %c0_46 = arith.constant 0 : index
    %c0_47 = arith.constant 0 : index
    %c0_48 = arith.constant 0 : index
    %56 = vector.load %arg7[%c0_46, %c0_47, %c0_48] : memref<1x8x28xbf16, #tpu.memory_space<vmem>>, vector<1x8x28xbf16>
    %57 = vector.shape_cast %56 : vector<1x8x28xbf16> to vector<8x28xbf16>
    %58 = vector.shape_cast %55 : vector<8x28xbf16> to vector<1x8x28xbf16>
    tpu.vector_store %arg7[%c0_46, %c0_47, %c0_48], %58 {strides = array<i32>} : memref<1x8x28xbf16, #tpu.memory_space<vmem>>, vector<1x8x28xbf16>,
    return
  }
  func.func @transform_0(%arg0: i32) -> (i32, i32, i32) {
    %c0_i32 = arith.constant 0 : i32
    %c0_i32_0 = arith.constant 0 : i32
    %c0_i32_1 = arith.constant 0 : i32
    return %arg0, %c0_i32, %c0_i32_0 : i32, i32, i32
  }
  func.func @transform_1(%arg0: i32) -> (i32, i32, i32) {
    %c0_i32 = arith.constant 0 : i32
    %c0_i32_0 = arith.constant 0 : i32
    %c0_i32_1 = arith.constant 0 : i32
    return %arg0, %c0_i32, %c0_i32_0 : i32, i32, i32
  }
  func.func @transform_2(%arg0: i32) -> (i32, i32, i32) {
    %c0_i32 = arith.constant 0 : i32
    %c0_i32_0 = arith.constant 0 : i32
    %c0_i32_1 = arith.constant 0 : i32
    %c0_i32_2 = arith.constant 0 : i32
    return %c0_i32, %c0_i32_0, %c0_i32_1 : i32, i32, i32
  }
  func.func @transform_3(%arg0: i32) -> (i32, i32) {
    %c0_i32 = arith.constant 0 : i32
    %c0_i32_0 = arith.constant 0 : i32
    %c0_i32_1 = arith.constant 0 : i32
    return %c0_i32, %c0_i32_0 : i32, i32
  }
  func.func @transform_4(%arg0: i32) -> (i32, i32) {
    %c0_i32 = arith.constant 0 : i32
    %c0_i32_0 = arith.constant 0 : i32
    %c0_i32_1 = arith.constant 0 : i32
    return %c0_i32, %c0_i32_0 : i32, i32
  }
  func.func @transform_5(%arg0: i32) -> (i32, i32, i32, i32) {
    %c0_i32 = arith.constant 0 : i32
    %c0_i32_0 = arith.constant 0 : i32
    %c0_i32_1 = arith.constant 0 : i32
    %c0_i32_2 = arith.constant 0 : i32
    return %arg0, %c0_i32, %c0_i32_0, %c0_i32_1 : i32, i32, i32, i32
  }
  func.func @transform_6(%arg0: i32) -> (i32, i32, i32) {
    %c0_i32 = arith.constant 0 : i32
    %c0_i32_0 = arith.constant 0 : i32
    %c0_i32_1 = arith.constant 0 : i32
    return %arg0, %c0_i32, %c0_i32_0 : i32, i32, i32
  }
}

</mosaic_0001>

<bundles_post_ra>
// kernel: tpu_custom_call.1
= control target key start
LH: loop header
LB: loop body
LE: loop exit
PB: predicated region body
PF: predicated region fallthrough
CT: control target
= control target key end

     0   :  { %12 = vsyncpa [#allocation3], 0  ;;  %s822_s0 = inlined_call_operand.vmem [shape: bf16[2,16,8], index: 0, kind: input, shape index: {}]   ;;  %s823_s1 = inlined_call_operand.vmem [shape: bf16[2,7,28], index: 1, kind: input, shape index: {}]   ;;  %s824_s2 = inlined_call_operand.vmem [shape: bf16[2,8,8], index: 2, kind: input, shape index: {}]   ;;  %s825_s3 = inlined_call_operand.vmem [shape: f32[1,8], index: 3, kind: input, shape index: {}]   ;;  %s826_s4 = inlined_call_operand.vmem [shape: bf16[8,7], index: 4, kind: input, shape index: {}]   ;;  %s827_s5 = inlined_call_operand.vmem [shape: bf16[2,9,4,8], index: 5, kind: output, shape index: {0}]   ;;  %s828_s6 = inlined_call_operand.hbm [shape: bf16[2,8,28], index: 6, kind: output, shape index: {1}]  }
   0x1   :  { %14 = vsyncpa [#allocation3 + $0x1], 0  ;;  %s699_s21 = smov 0   ;;  %s701_s22 = smov 0  }
   0x2   :  { %s703_s23 = smov 0   ;;  %s705_s24 = smov 0  }
   0x3 LB: > { %s720_s25 = sadd.s32 4294967295, %s660_s24   ;;  %s524_s26 = sadd.s32 4294967294, %s660_s24   ;;  %s660_s24 = sphi %s705_s24, %s834_s24   ;;  %s656_s23 = sphi %s703_s23, %s833_s23   ;;  %s652_s22 = sphi %s701_s22, %s832_s22   ;;  %s648_s21 = sphi %s699_s21, %s831_s21  }
   0x4   : > { %s724_s27 = sadd.s32 1, %s660_s24   ;;  %s168_s28 = sadd.s32 1, %s656_s23 }
   0x5   : > { %s165_s29 = ssub.s32 %s660_s24, %s724_s27  ;;  %p178_p0 = scmp.ne.s32.totalorder %s656_s23, %s652_s22 }
   0x6   : > { %p166_p1 = scmp.eq.s32.totalorder %s165_s29, 0  ;;  %p179_p2 = scmp.eq.s32.totalorder %s720_s25, 1 }
   0x7   : > { %p184_p3 = scmp.ne.s32.totalorder %s652_s22, %s648_s21  ;;  %p185_p4 = scmp.eq.s32.totalorder %s524_s26, 1 }
   0x8   : > { %s735_s30 = scalar_select %p166_p1, %s656_s23, %s168_s28  }
   0x9   : > { %p737_p5 = por %p179_p2, %p178_p0  ;;  %p741_p6 = por %p185_p4, %p184_p3 }
   0xa   : > { %p527_p7 = scmp.ge.s32.totalorder %s660_s24, 1  ;;  %p227_p8 = scmp.lt.s32.totalorder %s660_s24, 3 }
   0xc   : > { %p228_p9 = pnand %p527_p7, %p227_p8 }
   0xd   : > { %p266_p10 = scmp.lt.s32.totalorder (!%p228_p9), %s720_s25, 1  ;;  %s550_s16 = sshll.u32 (!%p228_p9), %s720_s25, 2 }
   0xe   : > { %231 = sbr.rel (%p228_p9) target bundleno = 192 (0xc0), region = 40  ;;  %s423_s20 = scalar_lea.hbm (!%p228_p9), %s828_s6, %s550_s16 }
   0xf   : > { %s427_s29 = sshll.u32 (!%p228_p9), %s423_s20, 4  ;;  %s618_s15 = scalar_lea.hbm (!%p228_p9), %s828_s6, 8  ;;  %s428_s29 = int_to_ptr.hbm [resolvable:$true] %s427_s29 }
  0x13   : > { %v284_v0 = vld [vmem:[%s824_s2] sm:$0xf]  ;;  %vm297_vm0 = vcmask 1043456   ;;  %vm382_vm1 = vcmask 1042432   ;;  %v541_v2 = vld [vmem:[%s824_s2 + $0x4] sm:$0xf] }
  0x14   : > { %v299_v1 = vsel %vm297_vm0, %v284_v0, 0  ;;  %s267_s13 = scalar_select %p266_p10, %s720_s25, 1  ;;  %v338_v3 = vsel %vm297_vm0, %v541_v2, 0  ;;  %v662_v4 = vmov 65535   ;;  %vm293_vm2 = vcmask 64512  }
  0x15   : > { %308 = vmatpush.bf16.msra.mxu0 %v299_v1  ;;  %v383_v5 = vsel %vm382_vm1, 4294967295, %v662_v4  ;;  %347 = vmatpush.bf16.msra.mxu1 %v338_v3  ;;  %v376_v10 = vld [vmem:[%s826_s4] sm:$0xf]  ;;  %vm378_vm3 = vcmask 56320   ;;  %vm317_vm4 = vcmask 58368   ;;  %v663_v11 = vmov 0  }
  0x16   : > { %s553_s14 = sshll.u32 %s267_s13, 3  ;;  %s531_s18 = sshll.u32 %s267_s13, 2  ;;  %v384_v6 = vsel %vm297_vm0, %v383_v5, 0  ;;  %v597_v12 = vld [vmem:[%s825_s3] ss:$0 sm:$0xff]  ;;  %vm402_vm5 = vcmask 224256  }
  0x17   : > { %s270_s17 = scalar_lea.vmem %s822_s0, %s553_s14  ;;  %s274_s26 = scalar_lea.vmem %s823_s1, %s531_s18 }
  0x18   : > { %v554_v7 = vld [vmem:[%s270_s17] sm:$0xff]  ;;  %s555_s9 = smul.u32 18, %s267_s13  ;;  %s263_s13 = sand.u32 1, %s652_s22  }
  0x19   : > { %v377_v8 = vld [vmem:[%s274_s26] sm:$0xf]  ;;  %537 = vmatmul.msk.bf16.vlgmr.msra.gmra.mxu0 %vm293_vm2, %v554_v7  ;;  %542 = vmatmul.msk.bf16.vlgmr.msra.gmra.mxu1 %vm293_vm2, %v554_v7  ;;  %s528_s17 = sshll.u32 %s263_s13, 2  ;;  %s410_s25 = scalar_lea.sflag [#allocation3], %s263_s13 }
  0x1a   : > { %v386_v9 = vand.u32 %v384_v6, %v377_v8  ;;  %s767_s12 = scalar_lea.vmem %s827_s5, %s555_s9  ;;  %s265_s26 = scalar_lea.vmem [#allocation2], %s528_s17 }
  0x1b   : > { %547 = vst.msk [vmem:[%s767_s12 + $0x10] sm:$0x3] %vm317_vm4, %v663_v11  ;;  %s425_s28 = sshll.u32 %s265_s26, 4  ;;  %s612_s9 = sshra.s32 %s428_s29, 4  ;;  %s426_s28 = int_to_ptr.vmem [resolvable:$true] %s425_s28  ;;  %s613_s9 = int_to_ptr.hbm [resolvable:$true] %s612_s9 }
  0x1c   : > { %395 = vmatpush.bf16.msra.mxu2 %v386_v9  ;;  %s614_s10 = scalar_lea.hbm %s613_s9, 4  ;;  %p619_p0 = scmp.lt.s32.totalorder %s613_s9, %s828_s6 }
  0x1d   : > { %p615_p11 = scmp.ne.s32.totalorder %s613_s9, %s614_s10  ;;  %p620_p1 = scmp.lt.s32.totalorder %s618_s15, %s614_s10 }
  0x1f   : > { %548 = vmatmul.msk.bf16.vlgmr.msra.gmra.mxu2 %vm378_vm3, %v376_v10  ;;  %p616_p12 = pnand %p615_p11, %p737_p5  ;;  %p621_p2 = por %p620_p1, %p619_p0 }
  0x21   : > { %p617_p13 = pneg %p616_p12 }
  0x23   : > { %p622_p3 = pnand %p621_p2, %p617_p13 }
  0x96   : > { %v310_v13 = vpop.f32.mrf.mxu0  ;;  %v349_v14 = vpop.f32.mrf.mxu1 }
  0x97   : > { %v311_v15 = vadd.f32 %v597_v12, %v310_v13  ;;  %v350_v16 = vadd.f32 %v597_v12, %v349_v14 }
  0x99   : > { %v315_v17 = vpack.c.bf16 %v311_v15, %v311_v15  ;;  %v354_v18 = vpack.c.bf16 %v350_v16, %v350_v16 }
  0x9b   : > { %318 = vst.msk [vmem:[%s767_s12] sm:$0x3] %vm317_vm4, %v315_v17 }
  0x9c   : > { %320 = vst.sshfl [vmem:[#allocation1] sm:$0xff pattern:$0x75643120] %v315_v17 }
  0x9d   : > { %543 = vst.msk [vmem:[%s767_s12 + $0x2] sm:$0x3] %vm317_vm4, %v354_v18 }
  0x9e   : > { %v312_v19 = vpop.f32.mrf.mxu0  ;;  %v351_v20 = vpop.f32.mrf.mxu1 }
  0x9f   : > { %v313_v21 = vadd.f32 %v597_v12, %v312_v19  ;;  %v352_v22 = vadd.f32 %v597_v12, %v351_v20 }
  0xa1   : > { %v316_v23 = vpack.c.bf16 %v313_v21, %v313_v21  ;;  %v355_v25 = vpack.c.bf16 %v352_v22, %v352_v22 }
  0xa2   : > { %v397_v24 = vpop.f32.mrf.mxu2 }
  0xa3   : > { %v322_v26 = vld [vmem:[#allocation1 + $0x1] ss:$2 sm:$0xff]  ;;  %539 = vst.msk [vmem:[%s767_s12 + $0x8] sm:$0x3] %vm317_vm4, %v316_v23  ;;  %v401_v27 = vpack.c.bf16 %v397_v24, %v397_v24 }
  0xa4   : > { %538 = vst.msk [vmem:[%s767_s12 + $0x4] sm:$0x3] %vm317_vm4, %v322_v26 }
  0xa5   : > { %329 = vst.sshfl [vmem:[#allocation1] sm:$0xff pattern:$0x75643120] %v316_v23 }
  0xa6   : > { %545 = vst.msk [vmem:[%s767_s12 + $0xa] sm:$0x3] %vm317_vm4, %v355_v25 }
  0xa7   : > { %403 = vst.msk [vmem:[%s265_s26] sm:$0xf] %vm402_vm5, %v401_v27 }
  0xa8   : > { %625 = shalt.err (!%p622_p3)
}
  0xa9   : > { %556 = dma.vmem_to_hbm [thread:$0]  (%p737_p5), %s426_s28, 64, %s428_s29, %s410_s25  }
  0xaa   : > { %v399_v28 = vpop.f32.mrf.mxu2 }
  0xac   : > { %v331_v29 = vld [vmem:[#allocation1 + $0x1] ss:$2 sm:$0xff] }
  0xad   : > { %540 = vst.msk [vmem:[%s767_s12 + $0xc] sm:$0x3] %vm317_vm4, %v331_v29 }
  0xae   : > { %359 = vst.sshfl [vmem:[#allocation1] sm:$0xff pattern:$0x75643120] %v354_v18 }
  0xb5   : > { %v361_v30 = vld [vmem:[#allocation1 + $0x1] ss:$2 sm:$0xff] }
  0xb6   : > { %544 = vst.msk [vmem:[%s767_s12 + $0x6] sm:$0x3] %vm317_vm4, %v361_v30 }
  0xb7   : > { %368 = vst.sshfl [vmem:[#allocation1] sm:$0xff pattern:$0x75643120] %v355_v25 }
  0xbe   : > { %v370_v31 = vld [vmem:[#allocation1 + $0x1] ss:$2 sm:$0xff] }
  0xbf   : > { %546 = vst.msk [vmem:[%s767_s12 + $0xe] sm:$0x3] %vm317_vm4, %v370_v31 }
  0xc0 PF: > { %p562_p4 = scmp.ge.s32.totalorder %s660_s24, 2  ;;  %s447_s7 = sand.u32 1, %s648_s21  }
  0xc1   : > { %s448_s13 = scalar_lea.sflag [#allocation3], %s447_s7 }
  0xc2   : > { %p559_p5 = pnand %p562_p4, %p741_p6 }
  0xc4   : > { %p560_p7 = pneg %p559_p5 }
  0xc6   : > { %643 = dma.done.wait (%p560_p7), %s448_s13, 64  }
  0xc7   : > { %645 = vsyncadd (%p560_p7), %s448_s13, 4294967232  ;;  %p17_p8 = scmp.ge.s32.totalorder %s724_s27, 4   ;;  %s831_s21 = smov %s652_s22 }
  0xc8   : > { %s832_s22 = smov %s656_s23  ;;  %s833_s23 = smov %s735_s30 }
  0xc9   : > { %s834_s24 = smov %s724_s27  ;;  %19 = sbr.rel (!%p17_p8) target bundleno = 3 (0x3), region = 103 }
  0xce   :  { %454 = vsyncpa [#allocation3], 1 }
  0xcf   :  { %456 = vsyncpa [#allocation3 + $0x1], 1 }

</bundles_post_ra>
